<compile_context>
chip_gen: v6e
topology: v6e:2x2x1
jax: 0.10.0
libtpu: 0.0.40
codegen_flags: <defaults>
</compile_context>

<pallas_src>
import jax
import jax.numpy as jnp
from jax.experimental import pallas as pl
from jax.experimental.pallas import tpu as pltpu


# ---------------------------------------------------------------------------
# Pallas kernel: 1x1 conv (channels matmul) + bias + ReLU, spatial on lanes.
# ---------------------------------------------------------------------------
def _conv1x1_bias_relu_kernel(x_ref, w_ref, b_ref, o_ref):
    # x_ref: (Cin, THW)   w_ref: (TCO, Cin)   b_ref: (TCO, 1)   o_ref: (TCO, THW)
    y = jnp.dot(w_ref[...], x_ref[...], preferred_element_type=jnp.float32)
    y = jnp.maximum(y + b_ref[...], 0.0)          # f32 epilogue (v5e-safe)
    o_ref[...] = y.astype(o_ref.dtype)


def _pick_hw_tile(hw, target=2048):
    """Lane tile: multiple of 128, <= target, with small padding overhead."""
    hw128 = pl.cdiv(hw, 128) * 128
    if hw128 <= target:
        return hw128                               # single lane tile per image
    for t in (2048, 1024, 512, 256, 128):
        if t > target:
            continue
        padded = pl.cdiv(hw, t) * t
        if padded - hw <= padded // 8:             # <= 12.5% padding waste
            return t
    return 128


def _pick_cout_tile(cout):
    """Tile Cout only when it is large (VMEM budget headroom on v7x)."""
    if cout <= 256:
        return cout
    for t in (256, 128, 64, 32, 16, 8):
        if cout % t == 0:
            return t
    return cout


def conv1x1_bias_relu(x3d, weight, bias, *, compute_dtype=jnp.bfloat16,
                      hw_tile_target=2048):
    """x3d: [N, Cin, HW] (spatial flattened, channels-first);
    weight: [Cout, Cin]; bias: [Cout].  Returns [N, Cout, HW] in x3d.dtype."""
    N, Cin, HW = x3d.shape
    Cout = weight.shape[0]
    out_dtype = x3d.dtype

    tile = _pick_hw_tile(HW, hw_tile_target)
    HWp = pl.cdiv(HW, tile) * tile
    if HWp != HW:
        x3d = jnp.pad(x3d, ((0, 0), (0, 0), (0, HWp - HW)))

    tco = _pick_cout_tile(Cout)

    if compute_dtype is not None:
        x3d = x3d.astype(compute_dtype)
        weight = weight.astype(compute_dtype)
    bias2d = bias.astype(jnp.float32).reshape(Cout, 1)

    grid = (N, HWp // tile, Cout // tco)

    y = pl.pallas_call(
        _conv1x1_bias_relu_kernel,
        out_shape=jax.ShapeDtypeStruct((N, Cout, HWp), out_dtype),
        grid_spec=pltpu.PrefetchScalarGridSpec(
            num_scalar_prefetch=0,
            grid=grid,
            in_specs=[
                # x: (Cin, tile) block; same block reused across the co axis.
                pl.BlockSpec((None, Cin, tile), lambda n, hw, co: (n, 0, hw)),
                # weight / bias: small, effectively VMEM-resident.
                pl.BlockSpec((tco, Cin), lambda n, hw, co: (co, 0)),
                pl.BlockSpec((tco, 1), lambda n, hw, co: (co, 0)),
            ],
            out_specs=pl.BlockSpec((None, tco, tile),
                                   lambda n, hw, co: (n, co, hw)),
        ),
        compiler_params=pltpu.CompilerParams(
            dimension_semantics=("parallel", "parallel", "parallel"),
            vmem_limit_bytes=48 * 1024 * 1024,   # explicit, with v7x headroom
        ),
    )(x3d, weight, bias2d)

    if HWp != HW:
        y = y[:, :, :HW]
    return y


# ---------------------------------------------------------------------------
# Glue: weight_norm, pixel shuffle, module forward.
# ---------------------------------------------------------------------------
def weight_norm_1x1(v, g):
    """PyTorch weight_norm(dim=0) for a 1x1 conv: w = g * v / ||v|| per out-ch."""
    norm = jnp.sqrt(jnp.sum(v.astype(jnp.float32) ** 2, axis=1, keepdims=True))
    return (g.reshape(-1, 1).astype(jnp.float32) * v.astype(jnp.float32) / norm
            ).astype(v.dtype)


def pixel_shuffle(x, r):
    # Matches torch.nn.PixelShuffle: [N, C*r*r, H, W] -> [N, C, H*r, W*r]
    N, Crr, H, W = x.shape
    C = Crr // (r * r)
    x = x.reshape(N, C, r, r, H, W)
    x = x.transpose(0, 1, 4, 2, 5, 3)
    return x.reshape(N, C, H * r, W * r)


def custom_pixel_shuffle_icnr(x, conv_v, conv_g, conv_bias, *, scale=2,
                              compute_dtype=jnp.bfloat16):
    """x: [N, Cin, H, W] (NCHW); conv_v: [Cout, Cin], conv_g: [Cout],
    conv_bias: [Cout] are the weight_norm'd 1x1 conv params (Cout = nf*scale^2).
    act_fn is ReLU; blur=False (module default)."""
    N, Cin, H, W = x.shape
    Cout = conv_v.shape[0]
    weight = weight_norm_1x1(conv_v, conv_g)       # effective conv weight
    x3d = x.reshape(N, Cin, H * W)                 # free view: spatial on lanes
    y = conv1x1_bias_relu(x3d, weight, conv_bias, compute_dtype=compute_dtype)
    y = y.reshape(N, Cout, H, W)                   # free view back to NCHW
    # TODO(synk): blur=True path (ReplicationPad2d((1,0,1,0)) + AvgPool2d(2,1)) not implemented; module default is blur=False.
    return pixel_shuffle(y, scale)                 # single XLA reshape+transpose


# ---------------------------------------------------------------------------
# Self-test.
# ---------------------------------------------------------------------------
if __name__ == "__main__":
    key = jax.random.PRNGKey(0)
    N, ni, H, W = 2, 4, 16, 16
    scale = 2
    nf = ni                        # nf defaults to ni
    Cout = nf * scale * scale      # 1x1 conv: ni -> nf * scale**2

    kx, kv, kg, kb = jax.random.split(key, 4)
    x = jax.random.normal(kx, (N, ni, H, W), dtype=jnp.float32)
    conv_v = jax.random.normal(kv, (Cout, ni), dtype=jnp.float32) * (2.0 / ni) ** 0.5
    conv_g = jax.random.uniform(kg, (Cout,), dtype=jnp.float32, minval=0.5, maxval=1.5)
    conv_b = jax.random.normal(kb, (Cout,), dtype=jnp.float32) * 0.01

    out = custom_pixel_shuffle_icnr(x, conv_v, conv_g, conv_b, scale=scale)
    out = jax.block_until_ready(out)

    # Pure-JAX reference, using the same bf16-cast x / effective weight as the
    # kernel (f32 math) so the comparison isolates the kernel itself.
    w_eff = weight_norm_1x1(conv_v, conv_g)
    xb = x.astype(jnp.bfloat16).astype(jnp.float32)
    wb = w_eff.astype(jnp.bfloat16).astype(jnp.float32)
    ref = jnp.einsum("nchw,oc->nohw", xb, wb) + conv_b[None, :, None, None]
    ref = jnp.maximum(ref, 0.0)
    ref = pixel_shuffle(ref, scale)

    assert out.shape == (N, nf, H * scale, W * scale), out.shape
    err = float(jnp.max(jnp.abs(out - ref)))
    assert jnp.allclose(out, ref, atol=1e-4, rtol=1e-4), err
    print("KERNEL_OK")
</pallas_src>

<mosaic_0001>
module attributes {stable_mosaic.version = 11 : i64} {
  func.func @_conv1x1_bias_relu_kernel(%arg0: i32, %arg1: i32, %arg2: i32, %arg3: memref<1x4x256xbf16, #tpu.memory_space<vmem>>, %arg4: memref<16x4xbf16, #tpu.memory_space<vmem>>, %arg5: memref<16x1xf32, #tpu.memory_space<vmem>>, %arg6: memref<1x16x256xf32, #tpu.memory_space<vmem>>) attributes {dimension_semantics = [#tpu.dimension_semantics<parallel>, #tpu.dimension_semantics<parallel>, #tpu.dimension_semantics<parallel>], iteration_bounds = array<i64: 2, 1, 1>, scalar_prefetch = 0 : i64, scratch_operands = 0 : i64, tpu.core_type = #tpu.core_type<tc>, window_params = [{transform_indices = @transform_0, window_bounds = array<i64: 1, 4, 256>}, {transform_indices = @transform_1, window_bounds = array<i64: 16, 4>}, {transform_indices = @transform_2, window_bounds = array<i64: 16, 1>}, {transform_indices = @transform_3, window_bounds = array<i64: 1, 16, 256>}]} {
    %c0 = arith.constant 0 : index
    %c0_0 = arith.constant 0 : index
    %0 = vector.load %arg4[%c0, %c0_0] : memref<16x4xbf16, #tpu.memory_space<vmem>>, vector<16x4xbf16>
    %c0_1 = arith.constant 0 : index
    %c0_2 = arith.constant 0 : index
    %c0_3 = arith.constant 0 : index
    %1 = vector.load %arg3[%c0_1, %c0_2, %c0_3] : memref<1x4x256xbf16, #tpu.memory_space<vmem>>, vector<1x4x256xbf16>
    %2 = vector.shape_cast %1 : vector<1x4x256xbf16> to vector<4x256xbf16>
    %cst = arith.constant dense<0.000000e+00> : vector<16x256xf32>
    %3 = tpu.matmul %0, %2, %cst {dimension_numbers = #tpu.dot_dimension_numbers<[1], [0], [0], [1], [0, 0, 1, 1], [], []>} : vector<16x4xbf16>, vector<4x256xbf16>, vector<16x256xf32> -> vector<16x256xf32>
    %c0_4 = arith.constant 0 : index
    %c0_5 = arith.constant 0 : index
    %4 = vector.load %arg5[%c0_4, %c0_5] : memref<16x1xf32, #tpu.memory_space<vmem>>, vector<16x1xf32>
    %5 = vector.broadcast %4 : vector<16x1xf32> to vector<16x256xf32>
    %6 = arith.addf %3, %5 : vector<16x256xf32>
    %cst_6 = arith.constant 0.000000e+00 : f32
    %7 = vector.broadcast %cst_6 : f32 to vector<16x256xf32>
    %8 = arith.maximumf %6, %7 : vector<16x256xf32>
    %c0_7 = arith.constant 0 : index
    %c0_8 = arith.constant 0 : index
    %c0_9 = arith.constant 0 : index
    %9 = vector.load %arg6[%c0_7, %c0_8, %c0_9] : memref<1x16x256xf32, #tpu.memory_space<vmem>>, vector<1x16x256xf32>
    %10 = vector.shape_cast %9 : vector<1x16x256xf32> to vector<16x256xf32>
    %11 = vector.shape_cast %8 : vector<16x256xf32> to vector<1x16x256xf32>
    tpu.vector_store %arg6[%c0_7, %c0_8, %c0_9], %11 {strides = array<i32>} : memref<1x16x256xf32, #tpu.memory_space<vmem>>, vector<1x16x256xf32>,
    return
  }
  func.func @transform_0(%arg0: i32, %arg1: i32, %arg2: i32) -> (i32, i32, i32) {
    %c0_i32 = arith.constant 0 : i32
    %c0_i32_0 = arith.constant 0 : i32
    return %arg0, %c0_i32, %arg1 : i32, i32, i32
  }
  func.func @transform_1(%arg0: i32, %arg1: i32, %arg2: i32) -> (i32, i32) {
    %c0_i32 = arith.constant 0 : i32
    %c0_i32_0 = arith.constant 0 : i32
    return %arg2, %c0_i32 : i32, i32
  }
  func.func @transform_2(%arg0: i32, %arg1: i32, %arg2: i32) -> (i32, i32) {
    %c0_i32 = arith.constant 0 : i32
    %c0_i32_0 = arith.constant 0 : i32
    return %arg2, %c0_i32 : i32, i32
  }
  func.func @transform_3(%arg0: i32, %arg1: i32, %arg2: i32) -> (i32, i32, i32) {
    %c0_i32 = arith.constant 0 : i32
    return %arg0, %arg2, %arg1 : i32, i32, i32
  }
}

</mosaic_0001>

<bundles_post_ra>
// kernel: tpu_custom_call.1
= control target key start
LH: loop header
LB: loop body
LE: loop exit
PB: predicated region body
PF: predicated region fallthrough
CT: control target
= control target key end

     0   :  { %8 = vsyncpa [#allocation3], 0  ;;  %s785_s0 = inlined_call_operand.vmem [shape: bf16[2,4,256], index: 0, kind: input, shape index: {}]   ;;  %s786_s1 = inlined_call_operand.vmem [shape: bf16[16,4], index: 1, kind: input, shape index: {}]   ;;  %s787_s2 = inlined_call_operand.vmem [shape: f32[16,1], index: 2, kind: input, shape index: {}]   ;;  %s788_s3 = inlined_call_operand.hbm [shape: f32[2,16,256], index: 3, kind: output, shape index: {}]  }
   0x1   :  { %10 = vsyncpa [#allocation3 + $0x1], 0  ;;  %s662_s12 = smov 0   ;;  %s664_s13 = smov 0  }
   0x2   :  { %s666_s14 = smov 0   ;;  %s668_s15 = smov 0  }
   0x3   :  { %s670_s16 = smov 0   ;;  %s672_s17 = smov 0  }
   0x4 LB: > { %s479_s18 = sadd.s32 4294967295, %s636_s17   ;;  %s480_s19 = sadd.s32 4294967294, %s636_s17   ;;  %s636_s17 = sphi %s672_s17, %s16_s17   ;;  %s632_s16 = sphi %s670_s16, %s795_s16   ;;  %s628_s15 = sphi %s668_s15, %s794_s15   ;;  %s624_s14 = sphi %s666_s14, %s793_s14   ;;  %s620_s13 = sphi %s664_s13, %s792_s13   ;;  %s616_s12 = sphi %s662_s12, %s791_s12  }
   0x5   : > { %s35_s20 = sadd.s32 1, %s632_s16  ;;  %s126_s21 = sadd.s32 1, %s624_s14 }
   0x6   : > { %p37_p0 = scmp.ge.s32.totalorder %s35_s20, 2  ;;  %p136_p1 = scmp.ne.s32.totalorder %s624_s14, %s620_s13 }
   0x7   : > { %p137_p2 = scmp.eq.s32.totalorder %s479_s18, 1  ;;  %p142_p3 = scmp.ne.s32.totalorder %s620_s13, %s616_s12 }
   0x8   : > { %s797_s20 = smov (%p37_p0, %s35_s20), 0  ;;  %p143_p5 = scmp.eq.s32.totalorder %s480_s19, 1 }
   0x9   : > { %p702_p4 = por %p137_p2, %p136_p1  ;;  %s119_s23 = ssub.s32 %s632_s16, %s797_s20 }
   0xa   : > { %p485_p6 = scmp.ge.s32.totalorder %s636_s17, 1  ;;  %p124_p7 = scmp.eq.s32.totalorder %s119_s23, 0 }
   0xb   : > { %p709_p8 = por %p143_p5, %p142_p3  ;;  %p192_p9 = scmp.lt.s32.totalorder %s636_s17, 3 }
   0xc   : > { %s715_s25 = scalar_select %p124_p7, %s624_s14, %s126_s21  }
   0xd   : > { %p193_p10 = pnand %p485_p6, %p192_p9 }
   0xe   : > { %p231_p11 = scmp.lt.s32.totalorder (!%p193_p10), %s628_s15, 1  ;;  %s227_s10 = sand.u32 (!%p193_p10), 1, %s620_s13  }
   0xf   : > { %196 = sbr.rel (%p193_p10) target bundleno = 248 (0xf8), region = 32  ;;  %s486_s11 = sshll.u32 (!%p193_p10), %s227_s10, 5 }
  0x10   : > { %s229_s18 = scalar_lea.vmem (!%p193_p10), [#allocation2], %s486_s11  ;;  %s499_s21 = sshll.u32 (!%p193_p10), %s628_s15, 9 }
  0x11   : > { %s365_s19 = sshll.u32 (!%p193_p10), %s229_s18, 4  ;;  %s738_s27 = scalar_lea.hbm (!%p193_p10), %s788_s3, %s499_s21  ;;  %s733_s19 = int_to_ptr.vmem [resolvable:$true] %s365_s19 }
  0x12   : > { %s639_s29 = smov (!%p193_p10), [#allocation2]  }
  0x13   : > { %s564_s30 = sshll.u32 (!%p193_p10), %s639_s29, 4  ;;  %s565_s30 = int_to_ptr.vmem [resolvable:$false] %s564_s30 }
  0x14   : > { %v638_v0 = vmov 0   ;;  %v258_v1 = vld [vmem:[%s787_s2] sm:$0xff]  ;;  %s232_s28 = scalar_select %p231_p11, %s628_s15, 1  ;;  %v259_v2 = vld [vmem:[%s787_s2 + $0x8] sm:$0xff]  ;;  %vm288_vm0 = vcmask 1041408   ;;  %vm284_vm1 = vcmask 31744  }
  0x15   : > { %327 = vmatprep.mubr.bf16.mxu0 %v638_v0  ;;  %558 = vset.pattern.permute.xlu0 %v638_v0  ;;  %v559_v6 = vld [vmem:[%s786_s1] sm:$0xff]   ;;  %s560_s15 = scalar_lea.vmem %s733_s19, 512  ;;  %p567_p1 = scmp.lt.s32.totalorder %s733_s19, %s565_s30 }
  0x16   : > { %262 = vperm.xlu0 %558, %v258_v1   ;;  %s498_s4 = sshll.u32 %s232_s28, 2  ;;  %s740_s28 = scalar_lea.sflag [#allocation3], %s227_s10 }
  0x17   : > { %s238_s7 = scalar_lea.vmem %s785_s0, %s498_s4  ;;  %p561_p12 = scmp.ne.s32.totalorder %s733_s19, %s560_s15 }
  0x18   : > { %v490_v3 = vld.sshfl [vmem:[%s238_s7] sm:$0x33 pattern:$0x76325410]  ;;  %s566_s4 = scalar_lea.vmem %s565_s30, 1024 }
  0x19   : > { %v283_v4 = vcombine.high %v490_v3, %v490_v3  ;;  %v290_v5 = vsel %vm288_vm0, %v490_v3, 0  ;;  %p562_p13 = pnand %p561_p12, %p702_p4  ;;  %p568_p2 = scmp.lt.s32.totalorder %s566_s4, %s560_s15 }
  0x1a   : > { %267 = vperm.xlu0 %558, %v259_v2  }
  0x1b   : > { %491 = vmatprep.subr.msk.bf16.mxu0 %vm288_vm0, %v283_v4  ;;  %p563_p0 = pneg %p562_p13  ;;  %p569_p3 = por %p568_p2, %p567_p1 }
  0x1c   : > { %310 = vmatpush1.bf16.msra.mxu0 %v290_v5 }
  0x1d   : > { %p570_p5 = pnand %p569_p3, %p563_p0 }
  0x1f   : > { %492 = vmatmul.mubr.msk.bf16.vlgmr.msra.gmra.mxu0 %vm284_vm1, %v559_v6 }
  0x91   : > { %v263_v7 = vpop.permute.xlu0 %262 }
  0x95   : > { %v268_v13 = vpop.permute.xlu0 %267 }
  0xdf   : > { %v329_v8 = vpop.f32.mrf.mxu0 }
  0xe0   : > { %v330_v9 = vadd.f32 %v329_v8, %v263_v7 }
  0xe1   : > { %v331_v10 = vpop.f32.mrf.mxu0 }
  0xe2   : > { %v338_v11 = vmax.f32 %v330_v9, 0.0  ;;  %v332_v12 = vadd.f32 %v331_v10, %v263_v7 }
  0xe3   : > { %v333_v14 = vpop.f32.mrf.mxu0 }
  0xe4   : > { %342 = vst [vmem:[%s229_s18] sm:$0xff] %v338_v11  ;;  %v339_v15 = vmax.f32 %v332_v12, 0.0  ;;  %v334_v16 = vadd.f32 %v333_v14, %v268_v13 }
  0xe5   : > { %v335_v17 = vpop.f32.mrf.mxu0 }
  0xe6   : > { %343 = vst [vmem:[%s229_s18 + $0x8] sm:$0xff] %v339_v15  ;;  %v340_v18 = vmax.f32 %v334_v16, 0.0  ;;  %v336_v19 = vadd.f32 %v335_v17, %v268_v13 }
  0xe8   : > { %344 = vst [vmem:[%s229_s18 + $0x10] sm:$0xff] %v340_v18  ;;  %v341_v20 = vmax.f32 %v336_v19, 0.0 }
  0xea   : > { %345 = vst [vmem:[%s229_s18 + $0x18] sm:$0xff] %v341_v20 }
  0xeb   : > { %573 = shalt.err (!%p570_p5)
}
  0xec   : > { %s574_s5 = scalar_lea.hbm %s738_s27, 512  ;;  %s578_s8 = scalar_lea.hbm %s788_s3, 1024 }
  0xed   : > { %p575_p6 = scmp.ne.s32.totalorder %s738_s27, %s574_s5  ;;  %p579_p10 = scmp.lt.s32.totalorder %s738_s27, %s788_s3 }
  0xee   : > { %p580_p11 = scmp.lt.s32.totalorder %s578_s8, %s574_s5 }
  0xef   : > { %p576_p7 = pnand %p575_p6, %p702_p4 }
  0xf0   : > { %p581_p12 = por %p580_p11, %p579_p10 }
  0xf1   : > { %p577_p9 = pneg %p576_p7 }
  0xf3   : > { %p582_p13 = pnand %p581_p12, %p577_p9 }
  0xf5   : > { %585 = shalt.err (!%p582_p13)
}
  0xf6   : > { %s640_s11 = smov 256   ;;  %s641_s18 = smov 16  }
  0xf7   : > { %500 = dma.vmem_to_hbm [thread:$0]  (%p702_p4), %s733_s19, 512, %s738_s27, %s740_s28, %s640_s11, %s640_s11, %s641_s18  }
  0xf8 PF: > { %p506_p0 = scmp.ge.s32.totalorder %s636_s17, 2  ;;  %s380_s21 = sand.u32 1, %s616_s12  }
  0xf9   : > { %s381_s23 = scalar_lea.sflag [#allocation3], %s380_s21 }
  0xfa   : > { %p503_p1 = pnand %p506_p0, %p709_p8 }
  0xfc   : > { %p504_p2 = pneg %p503_p1 }
  0xfe   : > { %611 = dma.done.wait (%p504_p2), %s381_s23, 512  }
  0xff   : > { %613 = vsyncadd (%p504_p2), %s381_s23, 4294966784  ;;  %s16_s17 = sadd.s32 1, %s636_s17   ;;  %s791_s12 = smov %s620_s13 }
 0x100   : > { %p13_p3 = scmp.ge.s32.totalorder %s16_s17, 4   ;;  %s792_s13 = smov %s624_s14 }
 0x101   : > { %s793_s14 = smov %s715_s25  ;;  %s794_s15 = smov %s632_s16 }
 0x102   : > { %s795_s16 = smov %s797_s20  ;;  %15 = sbr.rel (!%p13_p3) target bundleno = 4 (0x4), region = 73 }
 0x107   :  { %386 = vsyncpa [#allocation3], 1 }
 0x108   :  { %388 = vsyncpa [#allocation3 + $0x1], 1 }

</bundles_post_ra>
